<compile_context>
chip_gen: v7x
topology: tpu7x:2x2x1
jax: 0.10.0
libtpu: 0.0.40
codegen_flags: <defaults>
</compile_context>

<pallas_src>
import functools

import jax
import jax.numpy as jnp
from jax.experimental import pallas as pl
from jax.experimental.pallas import tpu as pltpu


def _round_up(x, m):
    return (x + m - 1) // m * m


def _mdrnn_cell_kernel(xh_ref, c_ref, wc_ref, bc_ref, wg_ref, bg_ref,
                       slab_ref, *, hiddens, latents, gaussians):
    """Fused LSTMCell + GMM head, writing one lane-dense output slab.

    Slab layout along the lane axis:
      [0:H)                  h_next
      [H:2H)                 c_next
      [2H:2H+stride)         mus (flat)
      [2H+stride:2H+2s)      sigmas = exp(.)
      [2H+2s:2H+2s+G)        logpi = log_softmax(pi)
      [2H+2s+G:2H+2s+G+2)    r, d
      remainder              zero padding up to a multiple of 128 lanes
    """
    xh = xh_ref[...]                       # (B, A+L+H)
    c = c_ref[...]                         # (B, H)

    # ---- LSTMCell: single fused matmul on pre-transposed weights ----
    gates = (jnp.dot(xh, wc_ref[...], preferred_element_type=jnp.float32)
             + bc_ref[...])                # (B, 4H)

    H = hiddens
    i_g = jax.nn.sigmoid(gates[:, 0 * H:1 * H])
    f_g = jax.nn.sigmoid(gates[:, 1 * H:2 * H])
    g_g = jnp.tanh(gates[:, 2 * H:3 * H])
    o_g = jax.nn.sigmoid(gates[:, 3 * H:4 * H])

    c_next = f_g * c + i_g * g_g
    h_next = o_g * jnp.tanh(c_next)

    # ---- GMM head: Linear(H -> (2L+1)*G + 2), weight pre-transposed ----
    out_full = (jnp.dot(h_next, wg_ref[...],
                        preferred_element_type=jnp.float32)
                + bg_ref[...])             # (B, out_dim)

    stride = gaussians * latents
    mus = out_full[:, :stride]
    sigmas = jnp.exp(out_full[:, stride:2 * stride])

    pi = out_full[:, 2 * stride:2 * stride + gaussians]      # (B, G)
    m = jnp.max(pi, axis=-1, keepdims=True)
    sh = pi - m
    logpi = sh - jnp.log(jnp.sum(jnp.exp(sh), axis=-1, keepdims=True))

    rd = out_full[:, 2 * stride + gaussians:2 * stride + gaussians + 2]

    # ---- pack everything into the single lane-dense slab ----
    slab_ref[...] = jnp.zeros_like(slab_ref)     # defines the lane padding
    slab_ref[:, 0:H] = h_next
    slab_ref[:, H:2 * H] = c_next
    off = 2 * H
    slab_ref[:, off:off + stride] = mus
    slab_ref[:, off + stride:off + 2 * stride] = sigmas
    slab_ref[:, off + 2 * stride:off + 2 * stride + gaussians] = logpi
    slab_ref[:, off + 2 * stride + gaussians:
             off + 2 * stride + gaussians + 2] = rd


def mdrnn_cell_forward(action, latent, hidden, params,
                       *, latents, actions, hiddens, gaussians):
    """One-step MDRNNCell forward (mode='lstm').

    action: (B, A)  latent: (B, L)  hidden: (h, c) each (B, H)
    Returns (mus, sigmas, logpi, r, d, (h_next, c_next)).
    """
    del actions  # implied by action.shape
    h, c = hidden
    B = action.shape[0]
    H = hiddens
    out_dim = (2 * latents + 1) * gaussians + 2
    stride = gaussians * latents
    slab_width = _round_up(2 * H + out_dim, 128)

    # Fused input: [action | latent | h]  -> one matmul against W_comb.
    xh = jnp.concatenate([action, latent, h], axis=1).astype(jnp.float32)
    c = c.astype(jnp.float32)

    # Pad batch to a multiple of 8 for sublane-dense vregs.
    B_pad = _round_up(max(B, 1), 8)
    if B_pad != B:
        xh = jnp.pad(xh, ((0, B_pad - B), (0, 0)))
        c = jnp.pad(c, ((0, B_pad - B), (0, 0)))

    kernel = functools.partial(_mdrnn_cell_kernel,
                               hiddens=hiddens, latents=latents,
                               gaussians=gaussians)

    # Tiny problem: no grid, every operand is a single full VMEM block.
    slab = pl.pallas_call(
        kernel,
        out_shape=jax.ShapeDtypeStruct((B_pad, slab_width), jnp.float32),
        in_specs=[pl.BlockSpec(memory_space=pltpu.VMEM)] * 6,
        out_specs=pl.BlockSpec(memory_space=pltpu.VMEM),
    )(xh, c,
      params["w_comb"], params["b_comb"],
      params["w_gmm_t"], params["b_gmm"])

    slab = slab[:B]
    h_next = slab[:, :H]
    c_next = slab[:, H:2 * H]
    off = 2 * H
    mus = slab[:, off:off + stride].reshape(B, gaussians, latents)
    sigmas = slab[:, off + stride:off + 2 * stride].reshape(B, gaussians,
                                                            latents)
    logpi = slab[:, off + 2 * stride:off + 2 * stride + gaussians]
    r = slab[:, off + 2 * stride + gaussians]
    d = slab[:, off + 2 * stride + gaussians + 1]
    return mus, sigmas, logpi, r, d, (h_next, c_next)


def init_params(key, *, latents, actions, hiddens, gaussians):
    """PyTorch-style uniform(-1/sqrt(H), 1/sqrt(H)) init.

    Returns (fused_params_for_kernel, raw_pytorch_layout_params).
    """
    in_dim = latents + actions
    out_dim = (2 * latents + 1) * gaussians + 2
    k = 1.0 / jnp.sqrt(jnp.float32(hiddens))
    keys = jax.random.split(key, 6)

    def u(kk, shape):
        return jax.random.uniform(kk, shape, jnp.float32, minval=-k, maxval=k)

    raw = {
        # nn.LSTMCell(latents+actions, hiddens)
        "w_ih": u(keys[0], (4 * hiddens, in_dim)),
        "w_hh": u(keys[1], (4 * hiddens, hiddens)),
        "b_ih": u(keys[2], (1, 4 * hiddens)),
        "b_hh": u(keys[3], (1, 4 * hiddens)),
        # nn.Linear(hiddens, (2*latents+1)*gaussians + 2)
        "w_gmm": u(keys[4], (out_dim, hiddens)),
        "b_gmm": u(keys[5], (1, out_dim)),
    }
    fused = {
        # (in_dim + H, 4H): xh @ w_comb == x @ W_ih.T + h @ W_hh.T
        "w_comb": jnp.concatenate([raw["w_ih"], raw["w_hh"]], axis=1).T,
        "b_comb": raw["b_ih"] + raw["b_hh"],
        # (H, out_dim): pre-transposed GMM weight
        "w_gmm_t": raw["w_gmm"].T,
        "b_gmm": raw["b_gmm"],
    }
    return fused, raw


if __name__ == "__main__":
    LATENTS, ACTIONS, HIDDENS, GAUSSIANS = 8, 4, 32, 5
    BATCH = 4

    key = jax.random.PRNGKey(0)
    kp, ka, kl, kh, kc = jax.random.split(key, 5)

    params, raw = init_params(kp, latents=LATENTS, actions=ACTIONS,
                              hiddens=HIDDENS, gaussians=GAUSSIANS)

    action = jax.random.normal(ka, (BATCH, ACTIONS), jnp.float32)
    latent = jax.random.normal(kl, (BATCH, LATENTS), jnp.float32)
    h0 = jax.random.normal(kh, (BATCH, HIDDENS), jnp.float32)
    c0 = jax.random.normal(kc, (BATCH, HIDDENS), jnp.float32)

    mus, sigmas, logpi, r, d, (h1, c1) = mdrnn_cell_forward(
        action, latent, (h0, c0), params,
        latents=LATENTS, actions=ACTIONS, hiddens=HIDDENS, gaussians=GAUSSIANS)

    jax.block_until_ready((mus, sigmas, logpi, r, d, h1, c1))

    # ---- pure-JAX reference using the unfused PyTorch formulation ----
    x = jnp.concatenate([action, latent], axis=1)
    gates = (x @ raw["w_ih"].T + raw["b_ih"]
             + h0 @ raw["w_hh"].T + raw["b_hh"])
    H = HIDDENS
    i_g = jax.nn.sigmoid(gates[:, :H])
    f_g = jax.nn.sigmoid(gates[:, H:2 * H])
    g_g = jnp.tanh(gates[:, 2 * H:3 * H])
    o_g = jax.nn.sigmoid(gates[:, 3 * H:])
    c_ref = f_g * c0 + i_g * g_g
    h_ref = o_g * jnp.tanh(c_ref)
    out_full = h_ref @ raw["w_gmm"].T + raw["b_gmm"]
    stride = GAUSSIANS * LATENTS
    mus_ref = out_full[:, :stride].reshape(BATCH, GAUSSIANS, LATENTS)
    sig_ref = jnp.exp(out_full[:, stride:2 * stride]).reshape(
        BATCH, GAUSSIANS, LATENTS)
    logpi_ref = jax.nn.log_softmax(
        out_full[:, 2 * stride:2 * stride + GAUSSIANS], axis=-1)
    r_ref = out_full[:, -2]
    d_ref = out_full[:, -1]

    assert mus.shape == (BATCH, GAUSSIANS, LATENTS)
    assert sigmas.shape == (BATCH, GAUSSIANS, LATENTS)
    assert logpi.shape == (BATCH, GAUSSIANS)
    assert r.shape == (BATCH,) and d.shape == (BATCH,)
    assert h1.shape == (BATCH, HIDDENS) and c1.shape == (BATCH, HIDDENS)

    tol = dict(rtol=1e-4, atol=1e-4)
    assert jnp.allclose(mus, mus_ref, **tol)
    assert jnp.allclose(sigmas, sig_ref, **tol)
    assert jnp.allclose(logpi, logpi_ref, **tol)
    assert jnp.allclose(r, r_ref, **tol)
    assert jnp.allclose(d, d_ref, **tol)
    assert jnp.allclose(h1, h_ref, **tol)
    assert jnp.allclose(c1, c_ref, **tol)

    print("KERNEL_OK")
</pallas_src>

<mosaic_0001>
module attributes {stable_mosaic.version = 11 : i64} {
  func.func @_mdrnn_cell_kernel(%arg0: memref<8x44xf32, #tpu.memory_space<vmem>>, %arg1: memref<8x32xf32, #tpu.memory_space<vmem>>, %arg2: memref<44x128xf32, #tpu.memory_space<vmem>>, %arg3: memref<1x128xf32, #tpu.memory_space<vmem>>, %arg4: memref<32x87xf32, #tpu.memory_space<vmem>>, %arg5: memref<1x87xf32, #tpu.memory_space<vmem>>, %arg6: memref<8x256xf32, #tpu.memory_space<vmem>>) attributes {dimension_semantics = [], scalar_prefetch = 0 : i64, scratch_operands = 0 : i64, tpu.core_type = #tpu.core_type<tc>} {
    %c0 = arith.constant 0 : index
    %c0_0 = arith.constant 0 : index
    %0 = vector.load %arg0[%c0, %c0_0] : memref<8x44xf32, #tpu.memory_space<vmem>>, vector<8x44xf32>
    %c0_1 = arith.constant 0 : index
    %c0_2 = arith.constant 0 : index
    %1 = vector.load %arg1[%c0_1, %c0_2] : memref<8x32xf32, #tpu.memory_space<vmem>>, vector<8x32xf32>
    %c0_3 = arith.constant 0 : index
    %c0_4 = arith.constant 0 : index
    %2 = vector.load %arg2[%c0_3, %c0_4] : memref<44x128xf32, #tpu.memory_space<vmem>>, vector<44x128xf32>
    %cst = arith.constant dense<0.000000e+00> : vector<8x128xf32>
    %3 = tpu.matmul %0, %2, %cst {dimension_numbers = #tpu.dot_dimension_numbers<[1], [0], [0], [1], [0, 0, 1, 1], [], []>} : vector<8x44xf32>, vector<44x128xf32>, vector<8x128xf32> -> vector<8x128xf32>
    %c0_5 = arith.constant 0 : index
    %c0_6 = arith.constant 0 : index
    %4 = vector.load %arg3[%c0_5, %c0_6] : memref<1x128xf32, #tpu.memory_space<vmem>>, vector<1x128xf32>
    %5 = vector.broadcast %4 : vector<1x128xf32> to vector<8x128xf32>
    %6 = arith.addf %3, %5 : vector<8x128xf32>
    %7 = vector.extract_strided_slice %6 {offsets = [0, 0], sizes = [8, 32], strides = [1, 1]} : vector<8x128xf32> to vector<8x32xf32>
    %8 = arith.negf %7 : vector<8x32xf32>
    %9 = math.exp %8 : vector<8x32xf32>
    %cst_7 = arith.constant 1.000000e+00 : f32
    %10 = vector.broadcast %cst_7 : f32 to vector<8x32xf32>
    %11 = arith.addf %10, %9 : vector<8x32xf32>
    %12 = arith.divf %10, %11 : vector<8x32xf32>
    %13 = vector.extract_strided_slice %6 {offsets = [0, 32], sizes = [8, 32], strides = [1, 1]} : vector<8x128xf32> to vector<8x32xf32>
    %14 = arith.negf %13 : vector<8x32xf32>
    %15 = math.exp %14 : vector<8x32xf32>
    %cst_8 = arith.constant 1.000000e+00 : f32
    %16 = vector.broadcast %cst_8 : f32 to vector<8x32xf32>
    %17 = arith.addf %16, %15 : vector<8x32xf32>
    %18 = arith.divf %16, %17 : vector<8x32xf32>
    %19 = vector.extract_strided_slice %6 {offsets = [0, 64], sizes = [8, 32], strides = [1, 1]} : vector<8x128xf32> to vector<8x32xf32>
    %20 = math.tanh %19 : vector<8x32xf32>
    %21 = vector.extract_strided_slice %6 {offsets = [0, 96], sizes = [8, 32], strides = [1, 1]} : vector<8x128xf32> to vector<8x32xf32>
    %22 = arith.negf %21 : vector<8x32xf32>
    %23 = math.exp %22 : vector<8x32xf32>
    %cst_9 = arith.constant 1.000000e+00 : f32
    %24 = vector.broadcast %cst_9 : f32 to vector<8x32xf32>
    %25 = arith.addf %24, %23 : vector<8x32xf32>
    %26 = arith.divf %24, %25 : vector<8x32xf32>
    %27 = arith.mulf %18, %1 : vector<8x32xf32>
    %28 = arith.mulf %12, %20 : vector<8x32xf32>
    %29 = arith.addf %27, %28 : vector<8x32xf32>
    %30 = math.tanh %29 : vector<8x32xf32>
    %31 = arith.mulf %26, %30 : vector<8x32xf32>
    %c0_10 = arith.constant 0 : index
    %c0_11 = arith.constant 0 : index
    %32 = vector.load %arg4[%c0_10, %c0_11] : memref<32x87xf32, #tpu.memory_space<vmem>>, vector<32x87xf32>
    %cst_12 = arith.constant dense<0.000000e+00> : vector<8x87xf32>
    %33 = tpu.matmul %31, %32, %cst_12 {dimension_numbers = #tpu.dot_dimension_numbers<[1], [0], [0], [1], [0, 0, 1, 1], [], []>} : vector<8x32xf32>, vector<32x87xf32>, vector<8x87xf32> -> vector<8x87xf32>
    %c0_13 = arith.constant 0 : index
    %c0_14 = arith.constant 0 : index
    %34 = vector.load %arg5[%c0_13, %c0_14] : memref<1x87xf32, #tpu.memory_space<vmem>>, vector<1x87xf32>
    %35 = vector.broadcast %34 : vector<1x87xf32> to vector<8x87xf32>
    %36 = arith.addf %33, %35 : vector<8x87xf32>
    %37 = vector.extract_strided_slice %36 {offsets = [0, 0], sizes = [8, 40], strides = [1, 1]} : vector<8x87xf32> to vector<8x40xf32>
    %38 = vector.extract_strided_slice %36 {offsets = [0, 40], sizes = [8, 40], strides = [1, 1]} : vector<8x87xf32> to vector<8x40xf32>
    %39 = math.exp %38 : vector<8x40xf32>
    %40 = vector.extract_strided_slice %36 {offsets = [0, 80], sizes = [8, 5], strides = [1, 1]} : vector<8x87xf32> to vector<8x5xf32>
    %cst_15 = arith.constant dense<0xFF800000> : vector<8xf32>
    %41 = vector.multi_reduction <maximumf>, %40, %cst_15 [1] : vector<8x5xf32> to vector<8xf32>
    %42 = vector.shape_cast %41 : vector<8xf32> to vector<8x1xf32>
    %43 = vector.broadcast %42 : vector<8x1xf32> to vector<8x5xf32>
    %44 = arith.subf %40, %43 : vector<8x5xf32>
    %45 = math.exp %44 : vector<8x5xf32>
    %cst_16 = arith.constant dense<0.000000e+00> : vector<8xf32>
    %46 = vector.multi_reduction <add>, %45, %cst_16 [1] : vector<8x5xf32> to vector<8xf32>
    %47 = vector.shape_cast %46 : vector<8xf32> to vector<8x1xf32>
    %48 = math.log %47 : vector<8x1xf32>
    %49 = vector.broadcast %48 : vector<8x1xf32> to vector<8x5xf32>
    %50 = arith.subf %44, %49 : vector<8x5xf32>
    %51 = vector.extract_strided_slice %36 {offsets = [0, 85], sizes = [8, 2], strides = [1, 1]} : vector<8x87xf32> to vector<8x2xf32>
    %cst_17 = arith.constant 0.000000e+00 : f32
    %52 = vector.broadcast %cst_17 : f32 to vector<8x256xf32>
    %c0_18 = arith.constant 0 : index
    %c0_19 = arith.constant 0 : index
    %53 = vector.load %arg6[%c0_18, %c0_19] : memref<8x256xf32, #tpu.memory_space<vmem>>, vector<8x256xf32>
    tpu.vector_store %arg6[%c0_18, %c0_19], %52 {strides = array<i32>} : memref<8x256xf32, #tpu.memory_space<vmem>>, vector<8x256xf32>,
    %c0_20 = arith.constant 0 : index
    %c0_21 = arith.constant 0 : index
    %54 = vector.load %arg6[%c0_20, %c0_21] : memref<8x256xf32, #tpu.memory_space<vmem>>, vector<8x32xf32>
    tpu.vector_store %arg6[%c0_20, %c0_21], %31 {strides = array<i32>} : memref<8x256xf32, #tpu.memory_space<vmem>>, vector<8x32xf32>,
    %c0_22 = arith.constant 0 : index
    %c32 = arith.constant 32 : index
    %55 = vector.load %arg6[%c0_22, %c32] : memref<8x256xf32, #tpu.memory_space<vmem>>, vector<8x32xf32>
    tpu.vector_store %arg6[%c0_22, %c32], %29 {strides = array<i32>} : memref<8x256xf32, #tpu.memory_space<vmem>>, vector<8x32xf32>,
    %c0_23 = arith.constant 0 : index
    %c64 = arith.constant 64 : index
    %56 = vector.load %arg6[%c0_23, %c64] : memref<8x256xf32, #tpu.memory_space<vmem>>, vector<8x40xf32>
    tpu.vector_store %arg6[%c0_23, %c64], %37 {strides = array<i32>} : memref<8x256xf32, #tpu.memory_space<vmem>>, vector<8x40xf32>,
    %c0_24 = arith.constant 0 : index
    %c104 = arith.constant 104 : index
    %57 = vector.load %arg6[%c0_24, %c104] : memref<8x256xf32, #tpu.memory_space<vmem>>, vector<8x40xf32>
    tpu.vector_store %arg6[%c0_24, %c104], %39 {strides = array<i32>} : memref<8x256xf32, #tpu.memory_space<vmem>>, vector<8x40xf32>,
    %c0_25 = arith.constant 0 : index
    %c144 = arith.constant 144 : index
    %58 = vector.load %arg6[%c0_25, %c144] : memref<8x256xf32, #tpu.memory_space<vmem>>, vector<8x5xf32>
    tpu.vector_store %arg6[%c0_25, %c144], %50 {strides = array<i32>} : memref<8x256xf32, #tpu.memory_space<vmem>>, vector<8x5xf32>,
    %c0_26 = arith.constant 0 : index
    %c149 = arith.constant 149 : index
    %59 = vector.load %arg6[%c0_26, %c149] : memref<8x256xf32, #tpu.memory_space<vmem>>, vector<8x2xf32>
    tpu.vector_store %arg6[%c0_26, %c149], %51 {strides = array<i32>} : memref<8x256xf32, #tpu.memory_space<vmem>>, vector<8x2xf32>,
    return
  }
}

</mosaic_0001>

<bundles_post_ra>
// kernel: tpu_custom_call.1
= control target key start
LH: loop header
LB: loop body
LE: loop exit
PB: predicated region body
PF: predicated region fallthrough
CT: control target
= control target key end

     0   :  { %11 = vsyncpa [#allocation3], 0  ;;  %s674_s0 = inlined_call_operand.hbm [shape: f32[8,44], index: 0, kind: input, shape index: {}]   ;;  %s675_s1 = inlined_call_operand.hbm [shape: f32[8,32], index: 1, kind: input, shape index: {}]   ;;  %s676_s2 = inlined_call_operand.hbm [shape: f32[44,128], index: 2, kind: input, shape index: {}]   ;;  %s677_s3 = inlined_call_operand.vmem [shape: f32[1,128], index: 3, kind: input, shape index: {}]   ;;  %s678_s4 = inlined_call_operand.hbm [shape: f32[32,87], index: 4, kind: input, shape index: {}]   ;;  %s679_s5 = inlined_call_operand.vmem [shape: f32[1,87], index: 5, kind: input, shape index: {}]   ;;  %s680_s6 = inlined_call_operand.hbm [shape: f32[8,256], index: 6, kind: output, shape index: {}]  }
   0x1   :  { %12 = vsyncpa [#allocation6], 0 }
   0x2   :  { %13 = vsyncpa [#allocation9], 0 }
   0x3   :  { %14 = vsyncpa [#allocation4], 0  ;;  %s554_s21 = smov [#allocation5]   ;;  %s555_s23 = smov [#allocation2]  }
   0x4   :  { %s31_s22 = sshll.u32 %s554_s21, 4  ;;  %s21_s24 = sshll.u32 %s555_s23, 4  ;;  %s32_s22 = int_to_ptr.vmem [resolvable:$true] %s31_s22  ;;  %s22_s24 = int_to_ptr.vmem [resolvable:$true] %s21_s24 }
   0x5   :  { %s436_s27 = scalar_lea.hbm %s675_s1, 128 }
   0x6   :  { %p437_p0 = scmp.ne.s32.totalorder %s675_s1, %s436_s27  ;;  %p440_p1 = scmp.lt.u32.totalorder %s436_s27, %s675_s1 }
   0x8   :  { %p442_p2 = pnand %p440_p1, %p437_p0 }
   0xa   :  { %445 = shalt.err (!%p442_p2)
}
   0xb   :  { %s446_s8 = scalar_lea.vmem %s32_s22, 128  ;;  %p451_p4 = scmp.lt.s32.totalorder %s32_s22, %s32_s22 }
   0xc   :  { %p447_p3 = scmp.ne.s32.totalorder %s32_s22, %s446_s8  ;;  %p452_p5 = scmp.lt.s32.totalorder %s446_s8, %s446_s8 }
   0xe   :  { %p453_p6 = por %p452_p5, %p451_p4 }
  0x10   :  { %p454_p7 = pnand %p453_p6, %p447_p3 }
  0x12   :  { %457 = shalt.err (!%p454_p7)
}
  0x13   :  { %34 = dma.hbm_to_vmem [thread:$0]  %s675_s1, 128, %s32_s22, [#allocation6]  }
  0x14   :  { %s458_s13 = scalar_lea.hbm %s674_s0, 128 }
  0x15   :  { %p459_p8 = scmp.ne.s32.totalorder %s674_s0, %s458_s13  ;;  %p462_p9 = scmp.lt.u32.totalorder %s458_s13, %s674_s0 }
  0x17   :  { %p464_p10 = pnand %p462_p9, %p459_p8 }
  0x19   :  { %467 = shalt.err (!%p464_p10)
}
  0x1a   :  { %s468_s18 = scalar_lea.vmem %s22_s24, 128  ;;  %p473_p12 = scmp.lt.s32.totalorder %s22_s24, %s22_s24 }
  0x1b   :  { %p469_p11 = scmp.ne.s32.totalorder %s22_s24, %s468_s18  ;;  %p474_p13 = scmp.lt.s32.totalorder %s468_s18, %s468_s18 }
  0x1d   :  { %p475_p0 = por %p474_p13, %p473_p12 }
  0x1f   :  { %p476_p1 = pnand %p475_p0, %p469_p11 }
  0x21   :  { %479 = shalt.err (!%p476_p1)
}
  0x22   :  { %24 = dma.hbm_to_vmem [thread:$0]  %s674_s0, 128, %s22_s24, [#allocation3]  }
  0x23   :  { %s556_s20 = smov [#allocation7]   ;;  %s480_s25 = scalar_lea.hbm %s676_s2, 768 }
  0x24   :  { %s40_s21 = sshll.u32 %s556_s20, 4  ;;  %p481_p2 = scmp.ne.s32.totalorder %s676_s2, %s480_s25  ;;  %s41_s21 = int_to_ptr.vmem [resolvable:$true] %s40_s21 }
  0x25   :  { %p484_p3 = scmp.lt.u32.totalorder %s480_s25, %s676_s2 }
  0x27   :  { %p486_p4 = pnand %p484_p3, %p481_p2 }
  0x29   :  { %489 = shalt.err (!%p486_p4)
}
  0x2a   :  { %s490_s30 = scalar_lea.vmem %s41_s21, 768  ;;  %p495_p6 = scmp.lt.s32.totalorder %s41_s21, %s41_s21 }
  0x2b   :  { %p491_p5 = scmp.ne.s32.totalorder %s41_s21, %s490_s30  ;;  %p496_p7 = scmp.lt.s32.totalorder %s490_s30, %s490_s30 }
  0x2d   :  { %p497_p8 = por %p496_p7, %p495_p6 }
  0x2f   :  { %p498_p9 = pnand %p497_p8, %p491_p5 }
  0x31   :  { %501 = shalt.err (!%p498_p9)
}
  0x32   :  { %s557_s0 = smov 128   ;;  %s558_s24 = smov 8  }
  0x33   :  { %46 = dma.hbm_to_vmem [thread:$0]  %s676_s2, 768, %s41_s21, [#allocation6], %s557_s0, %s557_s0, %s558_s24  }
  0x34   :  { %s559_s9 = smov [#allocation8]   ;;  %s502_s13 = scalar_lea.hbm %s678_s4, 512 }
  0x35   :  { %s54_s10 = sshll.u32 %s559_s9, 4  ;;  %p503_p10 = scmp.ne.s32.totalorder %s678_s4, %s502_s13  ;;  %s55_s10 = int_to_ptr.vmem [resolvable:$true] %s54_s10 }
  0x36   :  { %p506_p11 = scmp.lt.u32.totalorder %s502_s13, %s678_s4 }
  0x38   :  { %p508_p12 = pnand %p506_p11, %p503_p10 }
  0x3a   :  { %511 = shalt.err (!%p508_p12)
}
  0x3b   :  { %s512_s18 = scalar_lea.vmem %s55_s10, 512  ;;  %p517_p0 = scmp.lt.s32.totalorder %s55_s10, %s55_s10 }
  0x3c   :  { %p513_p13 = scmp.ne.s32.totalorder %s55_s10, %s512_s18  ;;  %p518_p1 = scmp.lt.s32.totalorder %s512_s18, %s512_s18 }
  0x3e   :  { %p519_p2 = por %p518_p1, %p517_p0 }
  0x40   :  { %p520_p3 = pnand %p519_p2, %p513_p13 }
  0x42   :  { %523 = shalt.err (!%p520_p3)
}
  0x43   :  { %60 = dma.hbm_to_vmem [thread:$0]  %s678_s4, 512, %s55_s10, [#allocation9], %s557_s0, %s557_s0, %s558_s24  }
  0x44   :  { %546 = dma.done.wait [#allocation3], 128  }
  0x45   :  { %547 = vsyncadd [#allocation3], 4294967168 }
  0x46   :  { %548 = dma.done.wait [#allocation6], 896  }
  0x47   :  { %549 = vsyncadd [#allocation6], 4294966400 }
  0x48   :  { %550 = dma.done.wait [#allocation9], 512  }
  0x49   :  { %551 = vsyncadd [#allocation9], 4294966784  ;;  %v560_v0 = vmov 0.0|0.0   ;;  %vm561_vm0 = vmmov 0   ;;  %v562_v1 = vmov 0.0   ;;  %v77_v2 = vld [vmem:[#allocation7] sm:$0xff] }
  0x4a   :  { %392 = vmatprep.subr.bf16.mxu0 %v560_v0  ;;  %402 = vmatprep.subr.bf16.mxu1 %v560_v0  ;;  %303 = vst [vmem:[#allocation10] sm:$0xff] %v562_v1  ;;  %304 = vst [vmem:[#allocation10 + $0x8] sm:$0xff] %v562_v1  ;;  %v78_v3 = vld [vmem:[#allocation7 + $0x8] sm:$0xff]  ;;  %v79_v4 = vld [vmem:[#allocation7 + $0x10] sm:$0xff]  ;;  %vm94_vm1 = vcmask 1043456   ;;  %vm563_vm2 = vmmov 1  }
  0x4b   :  { %378 = vmatprep.mubr.msk.f32.mxu0 %vm561_vm0, %v562_v1  ;;  %389 = vmatprep.mubr.msk.f32.mxu1 %vm561_vm0, %v562_v1  ;;  %v393_v5 = vpack.c.bf16 %v78_v3, %v77_v2  ;;  %v80_v6 = vld [vmem:[#allocation7 + $0x18] sm:$0xff]  ;;  %v81_v8 = vld [vmem:[#allocation7 + $0x20] sm:$0xff]  ;;  %v82_v9 = vld [vmem:[#allocation7 + $0x28] sm:$0xf]  ;;  %vm90_vm4 = vcmask 359424   ;;  %s564_s20 = smov 64  }
  0x4c   :  { %v396_v7 = vpack.c.bf16 %v80_v6, %v79_v4  ;;  %v399_v10 = vpack.c.bf16 %v82_v9, %v81_v8  ;;  %vm400_vm3 = vmpackc.low %vm94_vm1, %vm563_vm2  ;;  %v75_v11 = vld [vmem:[#allocation2] sm:$0xff]  ;;  %v76_v17 = vld [vmem:[#allocation5] sm:$0xff]  ;;  %s565_s21 = smov 32   ;;  %vm210_vm5 = vcmask 261120   ;;  %vm307_vm6 = vcmask 523520   ;;  %s567_s23 = smov [#allocation10]  }
  0x4d   :  { %394 = vmatpush3.bf16.msra.mxu0 %v393_v5  ;;  %v348_v12 = vld [vmem:[%s677_s3] ss:$0 sm:$0xff]  ;;  %v197_v29 = vld [vmem:[#allocation8 + $0x8] sm:$0xff]  ;;  %v198_v30 = vld [vmem:[#allocation8 + $0x10] sm:$0xff]  ;;  %vm285_vm7 = vcmask 695936   ;;  %vm321_vm8 = vcmask 130048  }
  0x4e   :  { %395 = vmatprep.subr.bf16.mxu0 %v560_v0  ;;  %v196_v28 = vld [vmem:[#allocation8] sm:$0xff]  ;;  %v199_v32 = vld [vmem:[#allocation8 + $0x18] sm:$0xff]  ;;  %vm296_vm9 = vcmask 39936   ;;  %vm313_vm10 = vcmask 851456   ;;  %vm319_vm11 = vcmask 1048384   ;;  %s337_s25 = sshll.u32 %s567_s23, 4  ;;  %s338_s25 = int_to_ptr.vmem [resolvable:$true] %s337_s25 }
  0x4f   :  { %v403_v31 = vpack.c.bf16 %v197_v29, %v196_v28  ;;  %v406_v33 = vpack.c.bf16 %v199_v32, %v198_v30  ;;  %v352_v38 = vld [vmem:[%s679_s5] ss:$0 sm:$0xff]  ;;  %s566_s5 = smov 48   ;;  %vm327_vm12 = vcmask 171136   ;;  %vm329_vm13 = vcmask 187560   ;;  %s524_s26 = scalar_lea.vmem %s338_s25, 256 }
  0x50   :  { %p525_p4 = scmp.ne.s32.totalorder %s338_s25, %s524_s26  ;;  %p529_p5 = scmp.lt.s32.totalorder %s338_s25, %s338_s25 }
  0x51   :  { %397 = vmatpush3.bf16.msra.mxu0 %v396_v7  ;;  %404 = vmatpush3.bf16.msra.mxu1 %v403_v31  ;;  %p530_p6 = scmp.lt.s32.totalorder %s524_s26, %s524_s26 }
  0x52   :  { %398 = vmatprep.subr.bf16.mxu0 %v560_v0  ;;  %405 = vmatprep.subr.bf16.mxu1 %v560_v0 }
  0x53   :  { %p531_p7 = por %p530_p6, %p529_p5 }
  0x55   :  { %401 = vmatpush3.bf16.msk.msra.mxu0 %vm400_vm3, %v399_v10  ;;  %407 = vmatpush3.bf16.msra.mxu1 %v406_v33  ;;  %p532_p8 = pnand %p531_p7, %p525_p4 }
  0x58   :  { %379 = vmatmul.mubr.msk.f32.vlgmr.msra.gmra.mrb[0].mxu0 %vm90_vm4, %v75_v11 }
 0x12b   :  { %v164_v13 = vpop.f32.mrb[0].mxu0 }
 0x12c   :  { %v165_v14 = vadd.f32 %v348_v12, %v164_v13  ;;  %v380_v15 = vpop.f32.mrb[1].mxu0 }
 0x12e   :  { %422 = vtanh.f32 %v165_v14  ;;  %v351_v18 = vmul.f32 -1.442695, %v165_v14 }
 0x130   :  { %424 = vpow2.f32 %v351_v18 }
 0x138   :  { %v423_v16 = vpop.eup %422 }
 0x139   :  { %181 = vrot.lane.b32.xlu0 %v423_v16, %s564_s20 }
 0x13a   :  { %v425_v19 = vpop.eup %424 }
 0x13b   :  { %v171_v20 = vadd.f32 1.0, %v425_v19 }
 0x13d   :  { %176 = vrot.lane.b32.xlu0 %v76_v17, %s565_s21  ;;  %426 = vrcp.f32 %v171_v20 }
 0x147   :  { %v427_v21 = vpop.eup %426 }
 0x1ab   :  { %v182_v22 = vpop.permute.xlu0 %181 }
 0x1ac   :  { %v184_v23 = vmul.f32 %v427_v21, %v182_v22 }
 0x1ae   :  { %186 = vrot.lane.b32.xlu1 %v184_v23, %s565_s21 }
 0x1af   :  { %v177_v24 = vpop.permute.xlu0 %176 }
 0x1b0   :  { %v179_v25 = vmul.f32 %v427_v21, %v177_v24 }
 0x220   :  { %v187_v26 = vpop.permute.xlu1 %186 }
 0x221   :  { %v189_v27 = vadd.f32 %v187_v26, %v179_v25 }
 0x223   :  { %428 = vtanh.f32 %v189_v27 }
 0x22d   :  { %v429_v34 = vpop.eup %428 }
 0x22e   :  { %192 = vrot.lane.b32.xlu1 %v429_v34, %s564_s20 }
 0x2a0   :  { %v193_v35 = vpop.permute.xlu1 %192 }
 0x2a1   :  { %v195_v36 = vmul.f32 %v427_v21, %v193_v35 }
 0x2a3   :  { %208 = vrot.lane.b32.xlu0 %v195_v36, %s565_s21 }
 0x315   :  { %v209_v37 = vpop.permute.xlu0 %208 }
 0x316   :  { %306 = vst.msk [vmem:[#allocation10] sm:$0xff] %vm210_vm5, %v209_v37  ;;  %390 = vmatmul.mubr.msk.f32.vlgmr.msra.gmra.mrb[0].mxu1 %vm210_vm5, %v209_v37 }
 0x317   :  { %308 = vst.msk [vmem:[#allocation10] sm:$0xff] %vm307_vm6, %v189_v27 }
 0x3e9   :  { %v279_v39 = vpop.f32.mrb[0].mxu1 }
 0x3ea   :  { %v280_v40 = vadd.f32 %v352_v38, %v279_v39  ;;  %v391_v41 = vpop.f32.mrb[1].mxu1 }
 0x3ec   :  { %v286_v42 = vsel %vm285_vm7, %v280_v40, -inf  ;;  %v283_v43 = vmul.f32 1.442695, %v280_v40 }
 0x3ed   :  { %287 = vmax.xlane.f32.xlu1 %v286_v42 }
 0x3ee   :  { %430 = vpow2.f32 %v283_v43 }
 0x3f8   :  { %v431_v44 = vpop.eup %430 }
 0x3fe   :  { %316 = vrot.lane.b32.xlu1 %v431_v44, %s564_s20 }
 0x47a   :  { %v288_v45 = vpop.xlane.xlu1 %287 }
 0x47b   :  { %v289_v46 = vsub.f32 %v280_v40, %v288_v45 }
 0x47d   :  { %v290_v47 = vmul.f32 1.442695, %v289_v46 }
 0x47e   :  { %v317_v48 = vpop.permute.xlu1 %316 }
 0x47f   :  { %432 = vpow2.f32 %v290_v47  ;;  %322 = vst.msk [vmem:[#allocation10 + $0x8] sm:$0xff] %vm321_vm8, %v317_v48 }
 0x489   :  { %v433_v49 = vpop.eup %432 }
 0x48a   :  { %293 = vrot.lane.b32.xlu0 %v433_v49, %s566_s5 }
 0x4fc   :  { %v294_v50 = vpop.permute.xlu0 %293 }
 0x4fd   :  { %v297_v51 = vsel %vm296_vm9, %v294_v50, 0.0 }
 0x4fe   :  { %298 = vadd.xlane.f32.xlu0 %v297_v51 }
 0x514   :  { %310 = vrot.lane.b32.xlu0 %v280_v40, %s564_s20 }
 0x58b   :  { %v299_v52 = vpop.xlane.xlu0 %298 }
 0x58c   :  { %434 = vlog2.f32 %v299_v52 }
 0x58f   :  { %v311_v53 = vpop.permute.xlu0 %310 }
 0x590   :  { %314 = vst.msk [vmem:[#allocation10] sm:$0xff] %vm313_vm10, %v311_v53 }
 0x591   :  { %320 = vst.msk [vmem:[#allocation10] sm:$0xff] %vm319_vm11, %v317_v48 }
 0x596   :  { %v435_v54 = vpop.eup %434 }
 0x597   :  { %v301_v55 = vmul.f32 0.6931472, %v435_v54 }
 0x599   :  { %v302_v56 = vsub.f32 %v289_v46, %v301_v55 }
 0x59b   :  { %324 = vrot.lane.b32.xlu1 %v302_v56, %s564_s20 }
 0x60d   :  { %v325_v57 = vpop.permute.xlu1 %324 }
 0x60e   :  { %328 = vst.msk [vmem:[#allocation10 + $0x8] sm:$0xff] %vm327_vm12, %v325_v57 }
 0x60f   :  { %330 = vst.msk [vmem:[#allocation10 + $0x8] sm:$0xff] %vm329_vm13, %v311_v53 }
 0x610   :  { %535 = shalt.err (!%p532_p8)
}
 0x611   :  { %s536_s29 = scalar_lea.hbm %s680_s6, 256 }
 0x612   :  { %p537_p9 = scmp.ne.s32.totalorder %s680_s6, %s536_s29  ;;  %p540_p10 = scmp.lt.u32.totalorder %s536_s29, %s680_s6 }
 0x614   :  { %p542_p11 = pnand %p540_p10, %p537_p9 }
 0x616   :  { %545 = shalt.err (!%p542_p11)
}
 0x617   :  { %340 = dma.vmem_to_hbm [thread:$0]  %s338_s25, 256, %s680_s6, [#allocation4]  }
 0x618   :  { %552 = dma.done.wait [#allocation4], 256  }
 0x619   :  { %553 = vsyncadd [#allocation4], 4294967040 }
 0x61a   :  { %344 = vsyncpa [#allocation3], 1 }
 0x61b   :  { %345 = vsyncpa [#allocation6], 1 }
 0x61c   :  { %346 = vsyncpa [#allocation9], 1 }
 0x61d   :  { %347 = vsyncpa [#allocation4], 1 }

</bundles_post_ra>
